<compile_context>
chip_gen: v6e
topology: v6e:2x2x1
jax: 0.10.0
libtpu: 0.0.40
codegen_flags: <defaults>
</compile_context>

<pallas_src>
import functools

import jax
import jax.numpy as jnp
from jax.experimental import pallas as pl
from jax.experimental.pallas import tpu as pltpu

# ----------------------------- config -------------------------------------
BS = 2            # batch
INSNUM = 16       # candidate instance queries from the visual encoder
SELECT_NUM = 8    # __C.SELECT_NUM
VIS_FEAT = 256    # decoder_output feature dim (nn.Linear(256, HIDDEN))
HIDDEN = 128      # __C.HIDDEN_SIZE
MASK_H = 16       # instance mask spatial
MASK_W = 16


# --------------------------- Pallas kernel ---------------------------------
def _qm_kernel(scores_ref,                                 # (bs, insnum) f32
               dec_ref, lang_ref, inst_ref,                # VMEM inputs
               wvs_ref, bvs_ref, wts_ref, bts_ref,         # VMEM params
               out_ref,                                    # (bs, H*W) f32
               *, select_num):
    f32 = jnp.float32
    cdt = wvs_ref.dtype                     # matmul compute dtype (bf16)
    bs, insnum = scores_ref.shape
    h = wts_ref.shape[0]
    hw = inst_ref.shape[-1]

    # ---- linear_vs over ALL candidate queries at once: (bs*insnum,256)@(256,H)
    # Selected rows are identical either way; unselected rows are masked later.
    xw = jnp.dot(dec_ref[...].astype(cdt), wvs_ref[...],
                 preferred_element_type=f32)
    xw = xw + bvs_ref[...].astype(f32)                       # (n, H)

    # ---- linear_ts over the text features: (bs, H) @ (H, H)
    yw = jnp.dot(lang_ref[...].astype(cdt), wts_ref[...],
                 preferred_element_type=f32)
    yw = yw + bts_ref[...].astype(f32)                       # (bs, H)

    # ---- cosine similarity (text-side norm dropped: argmax-invariant).
    # Lane reduces on the VPU/XLU; no transpose, no M=1 matmul.
    xw3 = xw.reshape(bs, insnum, h)                          # sublane split only
    dotp = jnp.sum(xw3 * yw[:, None, :], axis=-1, keepdims=True)   # (bs,insnum,1)
    nrm2 = jnp.sum(xw3 * xw3, axis=-1, keepdims=True)               # (bs,insnum,1)
    sim = dotp * jax.lax.rsqrt(nrm2 + 1e-12)                         # (bs,insnum,1)

    # ---- in-kernel top-k membership via rank test (replaces wrapper top_k).
    # rank[b,i] = #{j : s[b,j] > s[b,i]  or (s[b,j]==s[b,i] and j<i)}
    # selected  = rank < select_num   (== lax.top_k / torch.topk member set,
    #                                  lower-index tie-break)
    s_j = scores_ref[...][:, None, :].astype(f32)            # (bs, 1, insnum)
    i_idx = jax.lax.broadcasted_iota(jnp.int32, (bs, insnum, insnum), 1)
    j_idx = jax.lax.broadcasted_iota(jnp.int32, (bs, insnum, insnum), 2)
    own = jnp.sum(jnp.where(j_idx == i_idx, s_j, 0.0),
                  axis=2, keepdims=True)                     # (bs, insnum, 1)
    beats = (s_j > own) | ((s_j == own) & (j_idx < i_idx))
    rank = jnp.sum(beats.astype(jnp.int32), axis=2, keepdims=True)
    selected = rank < select_num                             # (bs, insnum, 1)

    # ---- first-occurrence argmax over the selected queries (matches
    # torch.argmax on the ascending-index masked_select ordering).
    sim_m = jnp.where(selected, sim, -1e30)                  # (bs, insnum, 1)
    best = jnp.max(sim_m, axis=1, keepdims=True)             # (bs, 1, 1)
    cand = jax.lax.broadcasted_iota(jnp.int32, (bs, insnum, 1), 1)
    first = jnp.min(jnp.where(sim_m >= best, cand, insnum),
                    axis=1, keepdims=True)                   # (bs, 1, 1)
    winner = (cand == first).astype(f32)                     # exact 0.0 / 1.0

    # ---- gather the winning mask (exact one-hot weighted sublane reduce),
    # single lane-dense store of the full (bs, H*W) slab.
    inst3 = inst_ref[...].reshape(bs, insnum, hw)            # sublane split only
    out_ref[...] = jnp.sum(winner * inst3, axis=1)           # (bs, H*W)


def _query_match_call(scores, dec_flat, lang, inst_flat,
                      w_vs, b_vs, w_ts, b_ts, select_num):
    """Single-invocation fused head.

    scores:    (bs, insnum)      f32  raw instance scores (top-k done in-kernel)
    dec_flat:  (bs*insnum, 256)  f32
    lang:      (bs, H)           f32
    inst_flat: (bs*insnum, H*W)  f32
    Returns (bs, H*W) f32 selected instance masks.
    """
    bs, insnum = scores.shape
    n_rows, vis = dec_flat.shape
    h = w_ts.shape[0]
    hw = inst_flat.shape[-1]
    # NOTE: hw (=MASK_H*MASK_W) is a multiple of 128 here; if production mask
    # sizes are not, pad the last dim in the wrapper and slice after the call
    # to keep the output store unmasked / lane-dense.

    # Tiny, accurate cost estimate: two small matmuls + a few VPU/XLU passes.
    flops = 2 * (n_rows * vis * h + bs * h * h) + 6 * n_rows * h
    bytes_accessed = (scores.size * scores.dtype.itemsize
                      + dec_flat.size * dec_flat.dtype.itemsize
                      + lang.size * lang.dtype.itemsize
                      + inst_flat.size * inst_flat.dtype.itemsize
                      + w_vs.size * w_vs.dtype.itemsize
                      + b_vs.size * b_vs.dtype.itemsize
                      + w_ts.size * w_ts.dtype.itemsize
                      + b_ts.size * b_ts.dtype.itemsize
                      + bs * hw * 4)
    cost = pl.CostEstimate(flops=int(flops), transcendentals=int(n_rows),
                           bytes_accessed=int(bytes_accessed))

    full2d = lambda i: (0, 0)
    return pl.pallas_call(
        functools.partial(_qm_kernel, select_num=select_num),
        out_shape=jax.ShapeDtypeStruct((bs, hw), jnp.float32),
        grid=(1,),                      # ~200 KB total: nothing to pipeline
        in_specs=[
            pl.BlockSpec((bs, insnum),  full2d),   # scores
            pl.BlockSpec((n_rows, vis), full2d),   # dec_flat
            pl.BlockSpec((bs, h),       full2d),   # lang
            pl.BlockSpec((n_rows, hw),  full2d),   # inst_flat
            pl.BlockSpec((vis, h),      full2d),   # w_vs
            pl.BlockSpec((1, h),        full2d),   # b_vs
            pl.BlockSpec((h, h),        full2d),   # w_ts
            pl.BlockSpec((1, h),        full2d),   # b_ts
        ],
        out_specs=pl.BlockSpec((bs, hw), full2d),
        compiler_params=pltpu.CompilerParams(
            dimension_semantics=("arbitrary",)),
        cost_estimate=cost,
    )(scores, dec_flat, lang, inst_flat, w_vs, b_vs, w_ts, b_ts)


# ------------------------------ wrapper -------------------------------------
def net_forward(decoder_output, instances, instances_scores, flat_lang_feat,
                w_vs, b_vs, w_ts, b_ts, select_num=SELECT_NUM):
    """Mirrors Net.forward (eval path) after the frozen encoders.

    decoder_output:   (bs, insnum, 256)
    instances:        (bs, insnum, MASK_H, MASK_W)
    instances_scores: (bs, insnum)
    flat_lang_feat:   (bs, HIDDEN)
    w_vs/w_ts may be bf16 (inference params); biases stay f32.
    Returns (selected_instance_masks (bs, MASK_H, MASK_W), all_instance).
    """
    bs, insnum = instances_scores.shape
    mh, mw = instances.shape[-2:]
    all_instance = instances  # detach().clone() equivalent (immutable in JAX)

    dec_flat = decoder_output.reshape(bs * insnum, -1)       # metadata only
    inst_flat = instances.reshape(bs * insnum, mh * mw)      # metadata only

    sel_masks = _query_match_call(instances_scores, dec_flat, flat_lang_feat,
                                  inst_flat, w_vs, b_vs, w_ts, b_ts,
                                  select_num)                # (bs, H*W)
    return sel_masks.reshape(bs, mh, mw), all_instance


# ------------------------------ reference -----------------------------------
def _reference(decoder_output, instances, instances_scores, flat_lang_feat,
               w_vs, b_vs, w_ts, b_ts, select_num=SELECT_NUM):
    """Pure-JAX mirror of the PyTorch eval path (same param dtype rounding)."""
    bs = decoder_output.shape[0]
    f32 = jnp.float32
    cdt = w_vs.dtype  # round activations to the (possibly bf16) param dtype
    _, top_idx = jax.lax.top_k(instances_scores, select_num)
    sel_idx = jnp.sort(top_idx, axis=1)          # masked_select keeps index order
    bi = jnp.arange(bs)[:, None]
    dec_sel = decoder_output[bi, sel_idx]
    inst_sel = instances[bi, sel_idx]
    x_new = dec_sel.astype(cdt).astype(f32) @ w_vs.astype(f32) + b_vs.astype(f32)[0]
    y_new = (flat_lang_feat.astype(cdt).astype(f32) @ w_ts.astype(f32)
             + b_ts.astype(f32)[0])
    xn = x_new * jax.lax.rsqrt(jnp.sum(x_new * x_new, -1, keepdims=True) + 1e-12)
    yn = y_new * jax.lax.rsqrt(jnp.sum(y_new * y_new, -1, keepdims=True) + 1e-12)
    sim = jnp.einsum("bsh,bh->bs", xn, yn)
    idx = jnp.argmax(sim, axis=-1)
    return inst_sel[jnp.arange(bs), idx]


# ------------------------------ main ----------------------------------------
if __name__ == "__main__":
    key = jax.random.PRNGKey(0)
    k = jax.random.split(key, 8)

    # Synthetic stand-ins for frozen encoder outputs.
    decoder_output = jax.random.normal(k[0], (BS, INSNUM, VIS_FEAT), jnp.float32)
    instances = jax.random.normal(k[1], (BS, INSNUM, MASK_H, MASK_W), jnp.float32)
    instances_scores = jax.random.uniform(k[2], (BS, INSNUM), jnp.float32)
    flat_lang_feat = jax.random.normal(k[3], (BS, HIDDEN), jnp.float32)

    # nn.Linear params, stored transposed as (in, out) so the kernel does x@W.
    w_vs = jax.random.normal(k[4], (VIS_FEAT, HIDDEN), jnp.float32) * 0.02
    b_vs = jax.random.normal(k[5], (1, HIDDEN), jnp.float32) * 0.02
    w_ts = jax.random.normal(k[6], (HIDDEN, HIDDEN), jnp.float32) * 0.02
    b_ts = jax.random.normal(k[7], (1, HIDDEN), jnp.float32) * 0.02

    # One-time inference param prep: bf16 weights for the MXU matmuls
    # (f32 accumulation in-kernel; post-matmul math stays f32 -> v5e safe).
    w_vs_c = w_vs.astype(jnp.bfloat16)
    w_ts_c = w_ts.astype(jnp.bfloat16)

    fwd = jax.jit(net_forward)
    selected, all_instance = fwd(decoder_output, instances, instances_scores,
                                 flat_lang_feat, w_vs_c, b_vs, w_ts_c, b_ts)
    jax.block_until_ready(selected)
    jax.block_until_ready(all_instance)

    ref_sel = _reference(decoder_output, instances, instances_scores,
                         flat_lang_feat, w_vs_c, b_vs, w_ts_c, b_ts)

    assert selected.shape == (BS, MASK_H, MASK_W)
    assert all_instance.shape == (BS, INSNUM, MASK_H, MASK_W)
    # The inference contract is the selected instance mask (exact gather).
    assert jnp.allclose(selected, ref_sel, atol=1e-6), "mismatch vs reference"
    assert jnp.array_equal(all_instance, instances)

    print("KERNEL_OK")
</pallas_src>

<mosaic_0001>
module attributes {stable_mosaic.version = 11 : i64} {
  func.func @_qm_kernel(%arg0: i32, %arg1: memref<2x16xf32, #tpu.memory_space<vmem>>, %arg2: memref<32x256xf32, #tpu.memory_space<vmem>>, %arg3: memref<2x128xf32, #tpu.memory_space<vmem>>, %arg4: memref<32x256xf32, #tpu.memory_space<vmem>>, %arg5: memref<256x128xbf16, #tpu.memory_space<vmem>>, %arg6: memref<1x128xf32, #tpu.memory_space<vmem>>, %arg7: memref<128x128xbf16, #tpu.memory_space<vmem>>, %arg8: memref<1x128xf32, #tpu.memory_space<vmem>>, %arg9: memref<2x256xf32, #tpu.memory_space<vmem>>) attributes {dimension_semantics = [#tpu.dimension_semantics<arbitrary>], iteration_bounds = array<i64: 1>, scalar_prefetch = 0 : i64, scratch_operands = 0 : i64, tpu.core_type = #tpu.core_type<tc>, window_params = [{pipeline_mode = #tpu.pipeline_mode<synchronous>, transform_indices = @transform_0, window_bounds = array<i64: 2, 16>}, {pipeline_mode = #tpu.pipeline_mode<synchronous>, transform_indices = @transform_1, window_bounds = array<i64: 32, 256>}, {pipeline_mode = #tpu.pipeline_mode<synchronous>, transform_indices = @transform_2, window_bounds = array<i64: 2, 128>}, {pipeline_mode = #tpu.pipeline_mode<synchronous>, transform_indices = @transform_3, window_bounds = array<i64: 32, 256>}, {pipeline_mode = #tpu.pipeline_mode<synchronous>, transform_indices = @transform_4, window_bounds = array<i64: 256, 128>}, {pipeline_mode = #tpu.pipeline_mode<synchronous>, transform_indices = @transform_5, window_bounds = array<i64: 1, 128>}, {pipeline_mode = #tpu.pipeline_mode<synchronous>, transform_indices = @transform_6, window_bounds = array<i64: 128, 128>}, {pipeline_mode = #tpu.pipeline_mode<synchronous>, transform_indices = @transform_7, window_bounds = array<i64: 1, 128>}, {pipeline_mode = #tpu.pipeline_mode<synchronous>, transform_indices = @transform_8, window_bounds = array<i64: 2, 256>}]} {
    %c0 = arith.constant 0 : index
    %c0_0 = arith.constant 0 : index
    %0 = vector.load %arg2[%c0, %c0_0] : memref<32x256xf32, #tpu.memory_space<vmem>>, vector<32x256xf32>
    %1 = arith.truncf %0 : vector<32x256xf32> to vector<32x256xbf16>
    %c0_1 = arith.constant 0 : index
    %c0_2 = arith.constant 0 : index
    %2 = vector.load %arg5[%c0_1, %c0_2] : memref<256x128xbf16, #tpu.memory_space<vmem>>, vector<256x128xbf16>
    %cst = arith.constant dense<0.000000e+00> : vector<32x128xf32>
    %3 = tpu.matmul %1, %2, %cst {dimension_numbers = #tpu.dot_dimension_numbers<[1], [0], [0], [1], [0, 0, 1, 1], [], []>} : vector<32x256xbf16>, vector<256x128xbf16>, vector<32x128xf32> -> vector<32x128xf32>
    %c0_3 = arith.constant 0 : index
    %c0_4 = arith.constant 0 : index
    %4 = vector.load %arg6[%c0_3, %c0_4] : memref<1x128xf32, #tpu.memory_space<vmem>>, vector<1x128xf32>
    %5 = vector.broadcast %4 : vector<1x128xf32> to vector<32x128xf32>
    %6 = arith.addf %3, %5 : vector<32x128xf32>
    %c0_5 = arith.constant 0 : index
    %c0_6 = arith.constant 0 : index
    %7 = vector.load %arg3[%c0_5, %c0_6] : memref<2x128xf32, #tpu.memory_space<vmem>>, vector<2x128xf32>
    %8 = arith.truncf %7 : vector<2x128xf32> to vector<2x128xbf16>
    %c0_7 = arith.constant 0 : index
    %c0_8 = arith.constant 0 : index
    %9 = vector.load %arg7[%c0_7, %c0_8] : memref<128x128xbf16, #tpu.memory_space<vmem>>, vector<128x128xbf16>
    %cst_9 = arith.constant dense<0.000000e+00> : vector<2x128xf32>
    %10 = tpu.matmul %8, %9, %cst_9 {dimension_numbers = #tpu.dot_dimension_numbers<[1], [0], [0], [1], [0, 0, 1, 1], [], []>} : vector<2x128xbf16>, vector<128x128xbf16>, vector<2x128xf32> -> vector<2x128xf32>
    %c0_10 = arith.constant 0 : index
    %c0_11 = arith.constant 0 : index
    %11 = vector.load %arg8[%c0_10, %c0_11] : memref<1x128xf32, #tpu.memory_space<vmem>>, vector<1x128xf32>
    %12 = vector.broadcast %11 : vector<1x128xf32> to vector<2x128xf32>
    %13 = arith.addf %10, %12 : vector<2x128xf32>
    %14 = vector.shape_cast %6 : vector<32x128xf32> to vector<2x16x128xf32>
    %15 = vector.shape_cast %13 : vector<2x128xf32> to vector<2x1x128xf32>
    %16 = vector.broadcast %15 : vector<2x1x128xf32> to vector<2x16x128xf32>
    %17 = arith.mulf %14, %16 : vector<2x16x128xf32>
    %cst_12 = arith.constant dense<0.000000e+00> : vector<2x16xf32>
    %18 = vector.multi_reduction <add>, %17, %cst_12 [2] : vector<2x16x128xf32> to vector<2x16xf32>
    %19 = vector.shape_cast %18 : vector<2x16xf32> to vector<2x16x1xf32>
    %20 = arith.mulf %14, %14 : vector<2x16x128xf32>
    %cst_13 = arith.constant dense<0.000000e+00> : vector<2x16xf32>
    %21 = vector.multi_reduction <add>, %20, %cst_13 [2] : vector<2x16x128xf32> to vector<2x16xf32>
    %22 = vector.shape_cast %21 : vector<2x16xf32> to vector<2x16x1xf32>
    %cst_14 = arith.constant 9.99999996E-13 : f32
    %23 = vector.broadcast %cst_14 : f32 to vector<2x16x1xf32>
    %24 = arith.addf %22, %23 : vector<2x16x1xf32>
    %25 = math.rsqrt %24 : vector<2x16x1xf32>
    %26 = arith.mulf %19, %25 : vector<2x16x1xf32>
    %c0_15 = arith.constant 0 : index
    %c0_16 = arith.constant 0 : index
    %27 = vector.load %arg1[%c0_15, %c0_16] : memref<2x16xf32, #tpu.memory_space<vmem>>, vector<2x16xf32>
    %28 = vector.shape_cast %27 : vector<2x16xf32> to vector<2x1x16xf32>
    %29 = tpu.iota {dimensions = array<i32: 1>} : vector<2x16x16xi32>
    %30 = tpu.iota {dimensions = array<i32: 2>} : vector<2x16x16xi32>
    %31 = arith.cmpi eq, %30, %29 : vector<2x16x16xi32>
    %cst_17 = arith.constant 0.000000e+00 : f32
    %32 = vector.shape_cast %28 : vector<2x1x16xf32> to vector<2x1x16xf32>
    %33 = vector.broadcast %32 : vector<2x1x16xf32> to vector<2x16x16xf32>
    %34 = vector.broadcast %cst_17 : f32 to vector<2x16x16xf32>
    %35 = arith.select %31, %33, %34 : vector<2x16x16xi1>, vector<2x16x16xf32>
    %cst_18 = arith.constant dense<0.000000e+00> : vector<2x16xf32>
    %36 = vector.multi_reduction <add>, %35, %cst_18 [2] : vector<2x16x16xf32> to vector<2x16xf32>
    %37 = vector.shape_cast %36 : vector<2x16xf32> to vector<2x16x1xf32>
    %38 = vector.broadcast %28 : vector<2x1x16xf32> to vector<2x16x16xf32>
    %39 = vector.broadcast %37 : vector<2x16x1xf32> to vector<2x16x16xf32>
    %40 = arith.cmpf ogt, %38, %39 : vector<2x16x16xf32>
    %41 = vector.broadcast %28 : vector<2x1x16xf32> to vector<2x16x16xf32>
    %42 = vector.broadcast %37 : vector<2x16x1xf32> to vector<2x16x16xf32>
    %43 = arith.cmpf oeq, %41, %42 : vector<2x16x16xf32>
    %44 = arith.cmpi slt, %30, %29 : vector<2x16x16xi32>
    %45 = arith.andi %43, %44 : vector<2x16x16xi1>
    %46 = arith.ori %40, %45 : vector<2x16x16xi1>
    %47 = arith.extui %46 : vector<2x16x16xi1> to vector<2x16x16xi32>
    %cst_19 = arith.constant dense<0> : vector<2x16xi32>
    %48 = vector.multi_reduction <add>, %47, %cst_19 [2] : vector<2x16x16xi32> to vector<2x16xi32>
    %49 = vector.shape_cast %48 : vector<2x16xi32> to vector<2x16x1xi32>
    %c8_i32 = arith.constant 8 : i32
    %50 = vector.broadcast %c8_i32 : i32 to vector<2x16x1xi32>
    %51 = arith.cmpi slt, %49, %50 : vector<2x16x1xi32>
    %cst_20 = arith.constant -1.000000e+30 : f32
    %52 = vector.broadcast %cst_20 : f32 to vector<2x16x1xf32>
    %53 = arith.select %51, %26, %52 : vector<2x16x1xi1>, vector<2x16x1xf32>
    %cst_21 = arith.constant dense<0xFF800000> : vector<2x1xf32>
    %54 = vector.multi_reduction <maximumf>, %53, %cst_21 [1] : vector<2x16x1xf32> to vector<2x1xf32>
    %55 = vector.shape_cast %54 : vector<2x1xf32> to vector<2x1x1xf32>
    %56 = tpu.iota {dimensions = array<i32: 1>} : vector<2x16x1xi32>
    %57 = vector.broadcast %55 : vector<2x1x1xf32> to vector<2x16x1xf32>
    %58 = arith.cmpf oge, %53, %57 : vector<2x16x1xf32>
    %c16_i32 = arith.constant 16 : i32
    %59 = vector.broadcast %c16_i32 : i32 to vector<2x16x1xi32>
    %60 = arith.select %58, %56, %59 : vector<2x16x1xi1>, vector<2x16x1xi32>
    %cst_22 = arith.constant dense<2147483647> : vector<2x1xi32>
    %61 = vector.multi_reduction <minsi>, %60, %cst_22 [1] : vector<2x16x1xi32> to vector<2x1xi32>
    %62 = vector.shape_cast %61 : vector<2x1xi32> to vector<2x1x1xi32>
    %63 = vector.broadcast %62 : vector<2x1x1xi32> to vector<2x16x1xi32>
    %64 = arith.cmpi eq, %56, %63 : vector<2x16x1xi32>
    %65 = arith.extui %64 : vector<2x16x1xi1> to vector<2x16x1xi32>
    %66 = arith.sitofp %65 : vector<2x16x1xi32> to vector<2x16x1xf32>
    %c0_23 = arith.constant 0 : index
    %c0_24 = arith.constant 0 : index
    %67 = vector.load %arg4[%c0_23, %c0_24] : memref<32x256xf32, #tpu.memory_space<vmem>>, vector<32x256xf32>
    %68 = vector.shape_cast %67 : vector<32x256xf32> to vector<2x16x256xf32>
    %69 = vector.broadcast %66 : vector<2x16x1xf32> to vector<2x16x256xf32>
    %70 = arith.mulf %69, %68 : vector<2x16x256xf32>
    %cst_25 = arith.constant dense<0.000000e+00> : vector<2x256xf32>
    %71 = vector.multi_reduction <add>, %70, %cst_25 [1] : vector<2x16x256xf32> to vector<2x256xf32>
    %c0_26 = arith.constant 0 : index
    %c0_27 = arith.constant 0 : index
    %72 = vector.load %arg9[%c0_26, %c0_27] : memref<2x256xf32, #tpu.memory_space<vmem>>, vector<2x256xf32>
    tpu.vector_store %arg9[%c0_26, %c0_27], %71 {strides = array<i32>} : memref<2x256xf32, #tpu.memory_space<vmem>>, vector<2x256xf32>,
    return
  }
  func.func @transform_0(%arg0: i32) -> (i32, i32) {
    %c0_i32 = arith.constant 0 : i32
    %c0_i32_0 = arith.constant 0 : i32
    %c0_i32_1 = arith.constant 0 : i32
    return %c0_i32, %c0_i32_0 : i32, i32
  }
  func.func @transform_1(%arg0: i32) -> (i32, i32) {
    %c0_i32 = arith.constant 0 : i32
    %c0_i32_0 = arith.constant 0 : i32
    %c0_i32_1 = arith.constant 0 : i32
    return %c0_i32, %c0_i32_0 : i32, i32
  }
  func.func @transform_2(%arg0: i32) -> (i32, i32) {
    %c0_i32 = arith.constant 0 : i32
    %c0_i32_0 = arith.constant 0 : i32
    %c0_i32_1 = arith.constant 0 : i32
    return %c0_i32, %c0_i32_0 : i32, i32
  }
  func.func @transform_3(%arg0: i32) -> (i32, i32) {
    %c0_i32 = arith.constant 0 : i32
    %c0_i32_0 = arith.constant 0 : i32
    %c0_i32_1 = arith.constant 0 : i32
    return %c0_i32, %c0_i32_0 : i32, i32
  }
  func.func @transform_4(%arg0: i32) -> (i32, i32) {
    %c0_i32 = arith.constant 0 : i32
    %c0_i32_0 = arith.constant 0 : i32
    %c0_i32_1 = arith.constant 0 : i32
    return %c0_i32, %c0_i32_0 : i32, i32
  }
  func.func @transform_5(%arg0: i32) -> (i32, i32) {
    %c0_i32 = arith.constant 0 : i32
    %c0_i32_0 = arith.constant 0 : i32
    %c0_i32_1 = arith.constant 0 : i32
    return %c0_i32, %c0_i32_0 : i32, i32
  }
  func.func @transform_6(%arg0: i32) -> (i32, i32) {
    %c0_i32 = arith.constant 0 : i32
    %c0_i32_0 = arith.constant 0 : i32
    %c0_i32_1 = arith.constant 0 : i32
    return %c0_i32, %c0_i32_0 : i32, i32
  }
  func.func @transform_7(%arg0: i32) -> (i32, i32) {
    %c0_i32 = arith.constant 0 : i32
    %c0_i32_0 = arith.constant 0 : i32
    %c0_i32_1 = arith.constant 0 : i32
    return %c0_i32, %c0_i32_0 : i32, i32
  }
  func.func @transform_8(%arg0: i32) -> (i32, i32) {
    %c0_i32 = arith.constant 0 : i32
    %c0_i32_0 = arith.constant 0 : i32
    %c0_i32_1 = arith.constant 0 : i32
    return %c0_i32, %c0_i32_0 : i32, i32
  }
}

</mosaic_0001>

<bundles_post_ra>
// kernel: net_forward.1
= control target key start
LH: loop header
LB: loop body
LE: loop exit
PB: predicated region body
PF: predicated region fallthrough
CT: control target
= control target key end

     0   :  { %13 = vsyncpa [#allocation3], 0  ;;  %s1073_s0 = inlined_call_operand.vmem [shape: f32[2,16], index: 0, kind: input, shape index: {}]   ;;  %s1074_s1 = inlined_call_operand.vmem [shape: f32[32,256], index: 1, kind: input, shape index: {}]   ;;  %s1075_s2 = inlined_call_operand.vmem [shape: f32[2,128], index: 2, kind: input, shape index: {}]   ;;  %s1076_s3 = inlined_call_operand.vmem [shape: f32[32,256], index: 3, kind: input, shape index: {}]   ;;  %s1077_s4 = inlined_call_operand.hbm [shape: bf16[256,128], index: 4, kind: input, shape index: {}]   ;;  %s1078_s5 = inlined_call_operand.vmem [shape: f32[1,128], index: 5, kind: input, shape index: {}]   ;;  %s1079_s6 = inlined_call_operand.hbm [shape: bf16[128,128], index: 6, kind: input, shape index: {}]   ;;  %s1080_s7 = inlined_call_operand.vmem [shape: f32[1,128], index: 7, kind: input, shape index: {}]   ;;  %s1081_s8 = inlined_call_operand.vmem [shape: f32[2,256], index: 8, kind: output, shape index: {}]  }
   0x1   :  { %14 = vsyncpa [#allocation5], 0  ;;  %s890_s27 = smov [#allocation2]  }
   0x2   :  { %s28_s28 = sshll.u32 %s890_s27, 4  ;;  %s29_s28 = int_to_ptr.vmem [resolvable:$true] %s28_s28 }
   0x3   :  { %s854_s29 = scalar_lea.vmem %s29_s28, 2048  ;;  %p859_p1 = scmp.lt.s32.totalorder %s29_s28, %s29_s28 }
   0x4   :  { %p855_p0 = scmp.ne.s32.totalorder %s29_s28, %s854_s29  ;;  %p860_p2 = scmp.lt.s32.totalorder %s854_s29, %s854_s29 }
   0x6   :  { %p861_p3 = por %p860_p2, %p859_p1 }
   0x8   :  { %p862_p4 = pnand %p861_p3, %p855_p0 }
   0xa   :  { %865 = shalt.err (!%p862_p4)
}
   0xb   :  { %s891_s30 = smov 64   ;;  %s892_s9 = smov 4  }
   0xc   :  { %34 = dma.hbm_to_vmem [thread:$0]  %s1077_s4, 2048, %s29_s28, [#allocation3], %s891_s30, %s891_s30, %s892_s9  }
   0xd   :  { %s893_s12 = smov [#allocation4]  }
   0xe   :  { %s42_s13 = sshll.u32 %s893_s12, 4  ;;  %s43_s13 = int_to_ptr.vmem [resolvable:$true] %s42_s13 }
   0xf   :  { %s874_s14 = scalar_lea.vmem %s43_s13, 1024  ;;  %p879_p6 = scmp.lt.s32.totalorder %s43_s13, %s43_s13 }
  0x10   :  { %p875_p5 = scmp.ne.s32.totalorder %s43_s13, %s874_s14  ;;  %p880_p7 = scmp.lt.s32.totalorder %s874_s14, %s874_s14 }
  0x12   :  { %p881_p8 = por %p880_p7, %p879_p6 }
  0x14   :  { %p882_p9 = pnand %p881_p8, %p875_p5 }
  0x16   :  { %885 = shalt.err (!%p882_p9)
}
  0x17   :  { %48 = dma.hbm_to_vmem [thread:$0]  %s1079_s6, 1024, %s43_s13, [#allocation5], %s891_s30, %s891_s30, %s892_s9  }
  0x18   :  { %886 = dma.done.wait [#allocation3], 2048  }
  0x19   :  { %887 = vsyncadd [#allocation3], 4294965248 }
  0x1a   :  { %888 = dma.done.wait [#allocation5], 1024  }
  0x1b   :  { %889 = vsyncadd [#allocation5], 4294966272  ;;  %v894_v0 = vmov 0.0   ;;  %vm895_vm0 = vmmov 0   ;;  %v814_v1 = vld [vmem:[#allocation2 + $0x78] sm:$0xff]   ;;  %v817_v4 = vld [vmem:[#allocation2 + $0x70] sm:$0xff]   ;;  %v371_v19 = vlaneseq }
  0x1c   :  { %785 = vmatprep.subr.bf16.mxu1 %v894_v0  ;;  %801 = vmatprep.mubr.msk.bf16.mxu1 %vm895_vm0, %v894_v0  ;;  %v815_v2 = vld [vmem:[#allocation4 + $0x38] sm:$0xff]   ;;  %v818_v5 = vld [vmem:[#allocation4 + $0x30] sm:$0xff]   ;;  %v820_v7 = vld [vmem:[#allocation2 + $0x68] sm:$0xff]   ;;  %v896_v17 = vmov 1966171168   ;;  %vm481_vm2 = vcmask 130048  }
  0x1d   :  { %748 = vmatprep.subr.bf16.mxu0 %v814_v1  ;;  %v816_v3 = vld [vmem:[#allocation2 + $0x38] sm:$0xff]   ;;  %786 = vmatpush3.bf16.msra.mxu1 %v815_v2  ;;  %v819_v6 = vld [vmem:[#allocation2 + $0x30] sm:$0xff]   ;;  %v821_v8 = vld [vmem:[#allocation4 + $0x28] sm:$0xff]   ;;  %v369_v18 = vunpack.c.l.s4 %v896_v17  ;;  %v957_v24 = vshrl.u32 %v371_v19, 7  ;;  %v969_v33 = vand.u32 127, %v371_v19  ;;  %v897_v1 = vmov 0  }
  0x1e   :  { %749 = vmatpush3.bf16.msra.mxu0 %v816_v3  ;;  %787 = vmatprep.subr.bf16.mxu1 %v894_v0  ;;  %v822_v9 = vld [vmem:[#allocation2 + $0x28] sm:$0xff]   ;;  %v823_v10 = vld [vmem:[#allocation2 + $0x60] sm:$0xff]   ;;  %v826_v13 = vld [vmem:[#allocation2 + $0x58] sm:$0xff]  }
  0x1f   :  { %750 = vmatprep.subr.bf16.mxu0 %v817_v4  ;;  %v824_v11 = vld [vmem:[#allocation4 + $0x20] sm:$0xff]   ;;  %v827_v14 = vld [vmem:[#allocation4 + $0x18] sm:$0xff]   ;;  %v829_v16 = vld [vmem:[#allocation2 + $0x50] sm:$0xff]   ;;  %v370_v23 = vunpack.c.0.s8 %v369_v18  ;;  %v972_v34 = vadd.s32 8, %v957_v24  ;;  %v988_v40 = vsub.s32 0, %v957_v24  ;;  %vm465_vm1 = vcmp.eq.s32.totalorder %v969_v33, %v957_v24 }
  0x20   :  { %v825_v12 = vld [vmem:[#allocation2 + $0x20] sm:$0xff]   ;;  %v828_v15 = vld [vmem:[#allocation2 + $0x18] sm:$0xff]   ;;  %v830_v20 = vld [vmem:[#allocation4 + $0x10] sm:$0xff]   ;;  %vm502_vm4 = vcmp.lt.s32.totalorder %v969_v33, %v957_v24 }
  0x21   :  { %788 = vmatpush3.bf16.msra.mxu1 %v818_v5  ;;  %v831_v21 = vld [vmem:[#allocation2 + $0x10] sm:$0xff]   ;;  %v832_v22 = vld [vmem:[#allocation2 + $0x48] sm:$0xff]   ;;  %v61_v28 = vld [vmem:[%s1074_s1 + $0x18] sm:$0xff]  ;;  %v967_v32 = vsub.s32 %v370_v23, %v957_v24  ;;  %vm466_vm3 = vcmp.eq.s32.totalorder %v969_v33, %v972_v34  ;;  %vm503_vm13 = vcmp.lt.s32.totalorder %v969_v33, %v972_v34 }
  0x22   :  { %751 = vmatpush3.bf16.msra.mxu0 %v819_v6  ;;  %789 = vmatprep.subr.bf16.mxu1 %v894_v0  ;;  %v833_v25 = vld [vmem:[#allocation4 + $0x8] sm:$0xff]   ;;  %v835_v29 = vld [vmem:[#allocation2 + $0x40] sm:$0xff]   ;;  %v60_v39 = vld [vmem:[%s1074_s1 + $0x10] sm:$0xff] }
  0x23   :  { %752 = vmatprep.subr.bf16.mxu0 %v820_v7  ;;  %v834_v26 = vld [vmem:[#allocation2 + $0x8] sm:$0xff]   ;;  %v836_v31 = vld [vmem:[#allocation4] sm:$0xff]   ;;  %v65_v44 = vld [vmem:[%s1074_s1 + $0x38] sm:$0xff] }
  0x24   :  { %v59_v27 = vld [vmem:[%s1074_s1 + $0x8] sm:$0xff]  ;;  %v254_v35 = vld [vmem:[%s1075_s2] sm:$0x3]  ;;  %v64_v59 = vld [vmem:[%s1074_s1 + $0x30] sm:$0xff] }
  0x25   :  { %790 = vmatpush3.bf16.msra.mxu1 %v821_v8  ;;  %v67_v30 = vpack.c.bf16 %v61_v28, %v59_v27  ;;  %v743_v36 = vld.sshfl [vmem:[%s1073_s0] sm:$0x11 pattern:$0x75316420]  ;;  %v63_v43 = vld [vmem:[%s1074_s1 + $0x28] sm:$0xff]  ;;  %v255_v45 = vpack.c.bf16 %v254_v35, %v254_v35 }
  0x26   :  { %753 = vmatpush3.bf16.msra.mxu0 %v822_v9  ;;  %791 = vmatprep.subr.bf16.mxu1 %v894_v0  ;;  %v837_v37 = vld [vmem:[#allocation2] sm:$0xff]   ;;  %v445_v41 = vcombine.high %v743_v36, %v743_v36  ;;  %v452_v42 = vrot.slane %v743_v36, %v967_v32  ;;  %v69_v49 = vpack.c.bf16 %v65_v44, %v63_v43 }
  0x27   :  { %754 = vmatprep.subr.bf16.mxu0 %v823_v10  ;;  %237 = vmatprep.mubr.bf16.mxu0 %v67_v30  ;;  %v58_v38 = vld [vmem:[%s1074_s1] sm:$0xff] }
  0x28   :  { %v459_v46 = vrot.slane %v445_v41, %v967_v32  ;;  %v470_v47 = vrot.slane %v452_v42, %v988_v40  ;;  %v66_v48 = vpack.c.bf16 %v60_v39, %v58_v38  ;;  %v62_v58 = vld [vmem:[%s1074_s1 + $0x20] sm:$0xff] }
  0x29   :  { %792 = vmatpush3.bf16.msra.mxu1 %v824_v11  ;;  %v68_v61 = vpack.c.bf16 %v64_v59, %v62_v58  ;;  %v717_v17 = vld [vmem:[%s1078_s5] ss:$0 sm:$0xff] }
  0x2a   :  { %755 = vmatpush3.bf16.msra.mxu0 %v825_v12  ;;  %793 = vmatprep.subr.bf16.mxu1 %v894_v0  ;;  %v474_v50 = vrot.slane %v459_v46, %v988_v40  ;;  %v477_v51 = vsel %vm465_vm1, %v470_v47, 0.0  ;;  %v478_v52 = vsel %vm466_vm3, %v470_v47, 0.0  ;;  %v734_v30 = vld [vmem:[%s1080_s7] ss:$0 sm:$0xff] }
  0x2b   :  { %756 = vmatprep.subr.bf16.mxu0 %v826_v13  ;;  %v482_v53 = vsel %vm481_vm2, %v477_v51, 0.0  ;;  %v485_v57 = vsel %vm481_vm2, %v478_v52, 0.0 }
  0x2c   :  { %v479_v54 = vsel %vm465_vm1, %v474_v50, 0.0  ;;  %v480_v55 = vsel %vm466_vm3, %v474_v50, 0.0  ;;  %483 = vadd.xlane.f32.xlu1 %v482_v53 }
  0x2d   :  { %794 = vmatpush3.bf16.msra.mxu1 %v827_v14  ;;  %v488_v56 = vsel %vm481_vm2, %v479_v54, 0.0  ;;  %v491_v60 = vsel %vm481_vm2, %v480_v55, 0.0 }
  0x2e   :  { %757 = vmatpush3.bf16.msra.mxu0 %v828_v15  ;;  %795 = vmatprep.subr.bf16.mxu1 %v894_v0 }
  0x2f   :  { %758 = vmatprep.subr.bf16.mxu0 %v829_v16  ;;  %489 = vadd.xlane.f32.xlu0 %v488_v56 }
  0x30   :  { %486 = vadd.xlane.f32.xlu1 %v485_v57 }
  0x31   :  { %796 = vmatpush3.bf16.msra.mxu1 %v830_v20 }
  0x32   :  { %759 = vmatpush3.bf16.msra.mxu0 %v831_v21  ;;  %797 = vmatprep.subr.bf16.mxu1 %v894_v0 }
  0x33   :  { %760 = vmatprep.subr.bf16.mxu0 %v832_v22  ;;  %492 = vadd.xlane.f32.xlu0 %v491_v60 }
  0x35   :  { %798 = vmatpush3.bf16.msra.mxu1 %v833_v25 }
  0x36   :  { %761 = vmatpush3.bf16.msra.mxu0 %v834_v26  ;;  %799 = vmatprep.subr.bf16.mxu1 %v894_v0 }
  0x37   :  { %762 = vmatprep.subr.bf16.mxu0 %v835_v29 }
  0x39   :  { %800 = vmatpush3.bf16.msra.mxu1 %v836_v31 }
  0x3a   :  { %763 = vmatpush3.bf16.msra.mxu0 %v837_v37 }
  0x3c   :  { %802 = vmatmul.mubr.bf16.vlgmr.msra.gmra.mxu1 %v255_v45 }
  0x3d   :  { %238 = vmatmul.mubr.bf16.vlgmr.msra.gmra.mxu0 %v66_v48 }
  0x3e   :  { %245 = vmatprep.mubr.bf16.mxu0 %v69_v49 }
  0x45   :  { %246 = vmatmul.mubr.bf16.gmra.mxu0 %v68_v61 }
  0xb5   :  { %v484_v62 = vpop.xlane.xlu1 %483 }
  0xb6   :  { %vm494_vm5 = vcmp.gt.f32.partialorder %v470_v47, %v484_v62  ;;  %vm498_vm6 = vcmp.eq.f32.partialorder %v470_v47, %v484_v62 }
  0xb7   :  { %vm504_vm7 = vmand %vm498_vm6, %vm502_vm4 }
  0xb8   :  { %v490_v63 = vpop.xlane.xlu0 %489  ;;  %vm508_vm10 = vmor %vm494_vm5, %vm504_vm7 }
  0xb9   :  { %vm496_vm8 = vcmp.gt.f32.partialorder %v474_v50, %v490_v63  ;;  %vm500_vm9 = vcmp.eq.f32.partialorder %v474_v50, %v490_v63  ;;  %v512_v2 = vsel %vm508_vm10, 1, %v897_v1  ;;  %v487_v3 = vpop.xlane.xlu1 %486 }
  0xba   :  { %vm506_vm11 = vmand %vm500_vm9, %vm502_vm4  ;;  %vm495_vm14 = vcmp.gt.f32.partialorder %v470_v47, %v487_v3  ;;  %vm499_vm15 = vcmp.eq.f32.partialorder %v470_v47, %v487_v3  ;;  %v516_v33 = vsel %vm481_vm2, %v512_v2, 0 }
  0xbb   :  { %vm510_vm12 = vmor %vm496_vm8, %vm506_vm11  ;;  %v518_v41 = vshrl.u32 %v516_v33, 16  ;;  %v517_v54 = vand.u32 65535, %v516_v33 }
  0xbc   :  { %v514_v4 = vsel %vm510_vm12, 1, %v897_v1  ;;  %v493_v5 = vpop.xlane.xlu0 %492  ;;  %vm505_vm0 = vmand %vm499_vm15, %vm503_vm13 }
  0xbd   :  { %vm497_vm1 = vcmp.gt.f32.partialorder %v474_v50, %v493_v5  ;;  %vm501_vm3 = vcmp.eq.f32.partialorder %v474_v50, %v493_v5  ;;  %v542_v6 = vsel %vm481_vm2, %v514_v4, 0  ;;  %vm509_vm6 = vmor %vm495_vm14, %vm505_vm0  ;;  %v520_v48 = vcvt.s32.f32 %v518_v41 }
  0xbe   :  { %vm507_vm5 = vmand %vm501_vm3, %vm503_vm13  ;;  %v544_v7 = vshrl.u32 %v542_v6, 16  ;;  %v513_v8 = vsel %vm509_vm6, 1, %v897_v1  ;;  %v543_v52 = vand.u32 65535, %v542_v6  ;;  %v519_v58 = vcvt.s32.f32 %v517_v54 }
  0xbf   :  { %vm511_vm4 = vmor %vm497_vm1, %vm507_vm5  ;;  %v529_v43 = vsel %vm481_vm2, %v513_v8, 0 }
  0xc0   :  { %v515_v9 = vsel %vm511_vm4, 1, %v897_v1  ;;  %v546_v10 = vcvt.s32.f32 %v544_v7  ;;  %v531_v49 = vshrl.u32 %v529_v43, 16  ;;  %v545_v55 = vcvt.s32.f32 %v543_v52 }
  0xc1   :  { %v555_v11 = vsel %vm481_vm2, %v515_v9, 0  ;;  %v530_v61 = vand.u32 65535, %v529_v43 }
  0xc2   :  { %549 = vadd.xlane.f32.xlu0 %v546_v10  ;;  %v557_v12 = vshrl.u32 %v555_v11, 16  ;;  %v533_v53 = vcvt.s32.f32 %v531_v49  ;;  %v556_v56 = vand.u32 65535, %v555_v11 }
  0xc3   :  { %v532_v63 = vcvt.s32.f32 %v530_v61 }
  0xc4   :  { %v559_v13 = vcvt.s32.f32 %v557_v12  ;;  %v558_v60 = vcvt.s32.f32 %v556_v56 }
  0xc6   :  { %562 = vadd.xlane.f32.xlu1 %v559_v13 }
  0xfc   :  { %v361_v14 = vpop.f32.mrf.mxu1 }
  0xfd   :  { %v764_v15 = vpop.f32.mrf.mxu0  ;;  %v362_v38 = vadd.f32 %v734_v30, %v361_v14 }
  0xfe   :  { %v803_v16 = vpop.f32.mrf.mxu1 }
  0xff   :  { %v765_v18 = vpop.f32.mrf.mxu0  ;;  %v374_v46 = vrot.slane %v362_v38, %v967_v32 }
 0x100   :  { %v766_v19 = vadd.f32 %v765_v18, %v764_v15  ;;  %v364_v20 = vpop.f32.mrf.mxu1 }
 0x101   :  { %v767_v21 = vpop.f32.mrf.mxu0  ;;  %v375_v50 = vcombine.high %v374_v46, %v374_v46  ;;  %v382_v59 = vrot.slane %v374_v46, %v967_v32 }
 0x102   :  { %v240_v22 = vadd.f32 %v766_v19, %v717_v17  ;;  %v804_v23 = vpop.f32.mrf.mxu1 }
 0x103   :  { %v768_v25 = vpop.f32.mrf.mxu0  ;;  %v389_v57 = vrot.slane %v375_v50, %v967_v32  ;;  %v393_v2 = vrot.slane %v382_v59, %v988_v40 }
 0x104   :  { %v769_v26 = vadd.f32 %v768_v25, %v767_v21  ;;  %v412_v27 = vmul.f32 %v240_v22, %v240_v22 }
 0x105   :  { %v770_v28 = vpop.f32.mrf.mxu0  ;;  %v397_v62 = vrot.slane %v389_v57, %v988_v40  ;;  %v400_v4 = vmul.f32 %v393_v2, %v240_v22 }
 0x106   :  { %v243_v29 = vadd.f32 %v769_v26, %v717_v17  ;;  %416 = vadd.xlane.f32.xlu0 %v412_v27 }
 0x107   :  { %v771_v31 = vpop.f32.mrf.mxu0 }
 0x108   :  { %v772_v35 = vadd.f32 %v771_v31, %v770_v28  ;;  %v413_v36 = vmul.f32 %v243_v29, %v243_v29  ;;  %v401_v5 = vmul.f32 %v393_v2, %v243_v29 }
 0x109   :  { %v773_v37 = vpop.f32.mrf.mxu0 }
 0x10a   :  { %v248_v39 = vadd.f32 %v772_v35, %v717_v17  ;;  %418 = vadd.xlane.f32.xlu1 %v413_v36 }
 0x10b   :  { %v774_v42 = vpop.f32.mrf.mxu0 }
 0x10c   :  { %v775_v44 = vadd.f32 %v774_v42, %v773_v37  ;;  %v414_v45 = vmul.f32 %v248_v39, %v248_v39  ;;  %v402_v1 = vmul.f32 %v397_v62, %v248_v39 }
 0x10e   :  { %v251_v47 = vadd.f32 %v775_v44, %v717_v17  ;;  %420 = vadd.xlane.f32.xlu0 %v414_v45 }
 0x110   :  { %v415_v51 = vmul.f32 %v251_v47, %v251_v47  ;;  %v403_v3 = vmul.f32 %v397_v62, %v251_v47 }
 0x112   :  { %422 = vadd.xlane.f32.xlu1 %v415_v51  ;;  %523 = vadd.xlane.f32.xlu0 %v520_v48 }
 0x116   :  { %536 = vadd.xlane.f32.xlu1 %v533_v53  ;;  %547 = vadd.xlane.f32.xlu0 %v545_v55 }
 0x11a   :  { %560 = vadd.xlane.f32.xlu1 %v558_v60  ;;  %521 = vadd.xlane.f32.xlu0 %v519_v58 }
 0x11e   :  { %534 = vadd.xlane.f32.xlu1 %v532_v63  ;;  %408 = vadd.xlane.f32.xlu0 %v402_v1 }
 0x122   :  { %410 = vadd.xlane.f32.xlu1 %v403_v3  ;;  %404 = vadd.xlane.f32.xlu0 %v400_v4 }
 0x126   :  { %406 = vadd.xlane.f32.xlu1 %v401_v5 }
 0x14b   :  { %v550_v6 = vpop.xlane.xlu0 %549 }
 0x14c   :  { %v552_v17 = vcvt.f32.s32 %v550_v6 }
 0x14e   :  { %v553_v25 = vshll.u32 %v552_v17, 16 }
 0x14f   :  { %v563_v32 = vpop.xlane.xlu1 %562 }
 0x150   :  { %v565_v18 = vcvt.f32.s32 %v563_v32 }
 0x152   :  { %v566_v26 = vshll.u32 %v565_v18, 16 }
 0x18f   :  { %v417_v7 = vpop.xlane.xlu0 %416 }
 0x190   :  { %v424_v13 = vadd.f32 1e-12, %v417_v7 }
 0x193   :  { %v419_v8 = vpop.xlane.xlu1 %418 }
 0x194   :  { %v425_v40 = vadd.f32 1e-12, %v419_v8 }
 0x197   :  { %v421_v9 = vpop.xlane.xlu0 %420 }
 0x198   :  { %v426_v10 = vadd.f32 1e-12, %v421_v9 }
 0x19a   :  { %838 = vrsqrt.f32 %v426_v10 }
 0x19b   :  { %v423_v11 = vpop.xlane.xlu1 %422  ;;  %v524_v12 = vpop.xlane.xlu0 %523 }
 0x19c   :  { %v427_v14 = vadd.f32 1e-12, %v423_v11  ;;  %v526_v27 = vcvt.f32.s32 %v524_v12 }
 0x19e   :  { %840 = vrsqrt.f32 %v427_v14  ;;  %v527_v39 = vshll.u32 %v526_v27, 16 }
 0x19f   :  { %v537_v15 = vpop.xlane.xlu1 %536  ;;  %v548_v16 = vpop.xlane.xlu0 %547  ;;  %842 = vrsqrt.f32 %v424_v13 }
 0x1a0   :  { %844 = vrsqrt.f32 %v425_v40  ;;  %v551_v21 = vcvt.f32.s32 %v548_v16  ;;  %v539_v28 = vcvt.f32.s32 %v537_v15 }
 0x1a2   :  { %v554_v31 = vadd.s32 %v553_v25, %v551_v21  ;;  %v540_v41 = vshll.u32 %v539_v28, 16  ;;  %v638_v21 = vld [vmem:[%s1076_s3 + $0x30] sm:$0xff] }
 0x1a3   :  { %v561_v19 = vpop.xlane.xlu1 %560  ;;  %v522_v20 = vpop.xlane.xlu0 %521 }
 0x1a4   :  { %v564_v22 = vcvt.f32.s32 %v561_v19  ;;  %v525_v35 = vcvt.f32.s32 %v522_v20  ;;  %vm570_vm2 = vcmp.lt.s32.totalorder %v554_v31, 8  ;;  %v636_v19 = vld [vmem:[%s1076_s3 + $0x20] sm:$0xff]  ;;  %v637_v20 = vld [vmem:[%s1076_s3 + $0x28] sm:$0xff] }
 0x1a6   :  { %v567_v33 = vadd.s32 %v566_v26, %v564_v22  ;;  %v528_v46 = vadd.s32 %v527_v39, %v525_v35  ;;  %v639_v22 = vld [vmem:[%s1076_s3 + $0x38] sm:$0xff]  ;;  %v632_v35 = vld [vmem:[%s1076_s3] sm:$0xff]  ;;  %v634_v39 = vld [vmem:[%s1076_s3 + $0x10] sm:$0xff] }
 0x1a7   :  { %v839_v23 = vpop.eup %838  ;;  %v535_v29 = vpop.xlane.xlu1 %534 }
 0x1a8   :  { %v409_v30 = vpop.xlane.xlu0 %408  ;;  %v538_v36 = vcvt.f32.s32 %v535_v29  ;;  %vm571_vm7 = vcmp.lt.s32.totalorder %v567_v33, 8  ;;  %vm568_vm8 = vcmp.lt.s32.totalorder %v528_v46, 8 }
 0x1a9   :  { %v434_v37 = vmul.f32 %v839_v23, %v409_v30 }
 0x1aa   :  { %v541_v47 = vadd.s32 %v540_v41, %v538_v36  ;;  %v635_v41 = vld [vmem:[%s1076_s3 + $0x18] sm:$0xff] }
 0x1ab   :  { %v841_v38 = vpop.eup %840  ;;  %v411_v42 = vpop.xlane.xlu1 %410  ;;  %v574_v48 = vsel %vm570_vm2, %v434_v37, -1e+30 }
 0x1ac   :  { %v405_v43 = vpop.xlane.xlu0 %404  ;;  %v435_v44 = vmul.f32 %v841_v38, %v411_v42  ;;  %v843_v45 = vpop.eup %842  ;;  %vm569_vm9 = vcmp.lt.s32.totalorder %v541_v47, 8  ;;  %v633_v38 = vld [vmem:[%s1076_s3 + $0x8] sm:$0xff] }
 0x1ad   :  { %v432_v50 = vmul.f32 %v843_v45, %v405_v43  ;;  %v845_v51 = vpop.eup %844 }
 0x1ae   :  { %v575_v49 = vsel %vm571_vm7, %v435_v44, -1e+30 }
 0x1af   :  { %v583_v52 = vmax.f32 %v574_v48, %v575_v49  ;;  %v407_v53 = vpop.xlane.xlu1 %406  ;;  %v572_v56 = vsel %vm568_vm8, %v432_v50, -1e+30 }
 0x1b0   :  { %v433_v54 = vmul.f32 %v845_v51, %v407_v53  ;;  %v898_v53 = vmov 1983009808  }
 0x1b1   :  { %v584_v55 = vrot.slane %v583_v52, 4 }
 0x1b2   :  { %v573_v57 = vsel %vm569_vm9, %v433_v54, -1e+30  ;;  %v682_v54 = vunpack.c.l.s4 %v898_v53 }
 0x1b3   :  { %v585_v58 = vmax.f32 %v583_v52, %v584_v55  ;;  %v576_v59 = vmax.f32 %v572_v56, %v573_v57 }
 0x1b5   :  { %v586_v60 = vrot.slane %v585_v58, 2  ;;  %v577_v61 = vrot.slane %v576_v59, 4 }
 0x1b7   :  { %v587_v62 = vmax.f32 %v585_v58, %v586_v60  ;;  %v578_v63 = vmax.f32 %v576_v59, %v577_v61 }
 0x1b9   :  { %v588_v1 = vrot.slane %v587_v62, 1  ;;  %v579_v2 = vrot.slane %v578_v63, 2 }
 0x1bb   :  { %v589_v3 = vmax.f32 %v587_v62, %v588_v1  ;;  %v580_v4 = vmax.f32 %v578_v63, %v579_v2  ;;  %v683_v62 = vunpack.c.0.s8 %v682_v54 }
 0x1bd   :  { %vm592_vm10 = vcmp.ge.f32.partialorder %v574_v48, %v589_v3  ;;  %vm593_vm11 = vcmp.ge.f32.partialorder %v575_v49, %v589_v3  ;;  %v581_v5 = vrot.slane %v580_v4, 1 }
 0x1be   :  { %v596_v6 = vsel %vm592_vm10, %v957_v24, 16  ;;  %v597_v32 = vsel %vm593_vm11, %v972_v34, 16  ;;  %vm701_vm10 = vcmask 1041409   ;;  %vm703_vm11 = vcmask 1043459  }
 0x1bf   :  { %vm609_vm12 = vcmp.lt.s32.totalorder %v596_v6, %v597_v32  ;;  %v582_v7 = vmax.f32 %v580_v4, %v581_v5 }
 0x1c0   :  { %v610_v8 = vsel %vm609_vm12, %v596_v6, %v597_v32  ;;  %v686_v32 = vsub.s32 %v683_v62, %v957_v24  ;;  %vm705_vm12 = vcmask 1045509  }
 0x1c1   :  { %v611_v9 = vrot.slane %v610_v8, 4  ;;  %vm590_vm13 = vcmp.ge.f32.partialorder %v572_v56, %v582_v7  ;;  %vm591_vm14 = vcmp.ge.f32.partialorder %v573_v57, %v582_v7 }
 0x1c2   :  { %v594_v10 = vsel %vm590_vm13, %v957_v24, 16  ;;  %v595_v11 = vsel %vm591_vm14, %v972_v34, 16  ;;  %vm707_vm13 = vcmask 1047559  }
 0x1c3   :  { %vm612_vm15 = vcmp.lt.s32.totalorder %v610_v8, %v611_v9  ;;  %vm598_vm0 = vcmp.lt.s32.totalorder %v594_v10, %v595_v11 }
 0x1c4   :  { %v613_v12 = vsel %vm612_vm15, %v610_v8, %v611_v9  ;;  %v599_v13 = vsel %vm598_vm0, %v594_v10, %v595_v11 }
 0x1c5   :  { %v614_v14 = vrot.slane %v613_v12, 2  ;;  %v600_v40 = vrot.slane %v599_v13, 4 }
 0x1c7   :  { %vm615_vm1 = vcmp.lt.s32.totalorder %v613_v12, %v614_v14  ;;  %vm601_vm3 = vcmp.lt.s32.totalorder %v599_v13, %v600_v40 }
 0x1c8   :  { %v616_v15 = vsel %vm615_vm1, %v613_v12, %v614_v14  ;;  %v602_v16 = vsel %vm601_vm3, %v599_v13, %v600_v40 }
 0x1c9   :  { %v617_v17 = vrot.slane %v616_v15, 1  ;;  %v603_v18 = vrot.slane %v602_v16, 2 }
 0x1cb   :  { %vm618_vm6 = vcmp.lt.s32.totalorder %v616_v15, %v617_v17  ;;  %vm604_vm5 = vcmp.lt.s32.totalorder %v602_v16, %v603_v18 }
 0x1cc   :  { %v619_v23 = vsel %vm618_vm6, %v616_v15, %v617_v17  ;;  %v605_v25 = vsel %vm604_vm5, %v602_v16, %v603_v18 }
 0x1cd   :  { %vm622_vm4 = vcmp.eq.s32.totalorder %v957_v24, %v619_v23  ;;  %vm623_vm2 = vcmp.eq.s32.totalorder %v972_v34, %v619_v23  ;;  %v606_v26 = vrot.slane %v605_v25, 1 }
 0x1ce   :  { %v746_v27 = vsel %vm622_vm4, 1.0, %v894_v0  ;;  %v747_v28 = vsel %vm623_vm2, 1.0, %v894_v0 }
 0x1cf   :  { %v644_v29 = vmul.f32 %v746_v27, %v636_v19  ;;  %v645_v30 = vmul.f32 %v746_v27, %v637_v20  ;;  %v646_v31 = vmul.f32 %v747_v28, %v638_v21  ;;  %v647_v33 = vmul.f32 %v747_v28, %v639_v22 }
 0x1d0   :  { %vm607_vm7 = vcmp.lt.s32.totalorder %v605_v25, %v606_v26 }
 0x1d1   :  { %v662_v36 = vadd.f32 %v646_v31, %v644_v29  ;;  %v669_v37 = vadd.f32 %v647_v33, %v645_v30  ;;  %v608_v42 = vsel %vm607_vm7, %v605_v25, %v606_v26 }
 0x1d2   :  { %vm620_vm8 = vcmp.eq.s32.totalorder %v957_v24, %v608_v42  ;;  %vm621_vm9 = vcmp.eq.s32.totalorder %v972_v34, %v608_v42 }
 0x1d3   :  { %v663_v43 = vrot.slane %v662_v36, 4  ;;  %v670_v44 = vrot.slane %v669_v37, 4  ;;  %v744_v45 = vsel %vm620_vm8, 1.0, %v894_v0  ;;  %v745_v46 = vsel %vm621_vm9, 1.0, %v894_v0 }
 0x1d4   :  { %v640_v47 = vmul.f32 %v744_v45, %v632_v35  ;;  %v641_v48 = vmul.f32 %v744_v45, %v633_v38  ;;  %v642_v49 = vmul.f32 %v745_v46, %v634_v39  ;;  %v643_v50 = vmul.f32 %v745_v46, %v635_v41 }
 0x1d5   :  { %v664_v51 = vadd.f32 %v663_v43, %v662_v36  ;;  %v671_v52 = vadd.f32 %v670_v44, %v669_v37 }
 0x1d6   :  { %v648_v55 = vadd.f32 %v642_v49, %v640_v47  ;;  %v655_v56 = vadd.f32 %v643_v50, %v641_v48 }
 0x1d7   :  { %v665_v57 = vrot.slane %v664_v51, 2  ;;  %v672_v58 = vrot.slane %v671_v52, 2 }
 0x1d8   :  { %v649_v59 = vrot.slane %v648_v55, 4  ;;  %v656_v34 = vrot.slane %v655_v56, 4 }
 0x1d9   :  { %v666_v60 = vadd.f32 %v665_v57, %v664_v51  ;;  %v673_v61 = vadd.f32 %v672_v58, %v671_v52 }
 0x1da   :  { %v650_v63 = vadd.f32 %v649_v59, %v648_v55  ;;  %v657_v1 = vadd.f32 %v656_v34, %v655_v56 }
 0x1db   :  { %v667_v0 = vrot.slane %v666_v60, 1  ;;  %v674_v2 = vrot.slane %v673_v61, 1 }
 0x1dc   :  { %v651_v3 = vrot.slane %v650_v63, 2  ;;  %v658_v4 = vrot.slane %v657_v1, 2 }
 0x1dd   :  { %v668_v5 = vadd.f32 %v667_v0, %v666_v60  ;;  %v675_v6 = vadd.f32 %v674_v2, %v673_v61 }
 0x1de   :  { %v652_v7 = vadd.f32 %v651_v3, %v650_v63  ;;  %v659_v8 = vadd.f32 %v658_v4, %v657_v1 }
 0x1df   :  { %v688_v9 = vcombine.low %v668_v5, %v675_v6 }
 0x1e0   :  { %v653_v10 = vrot.slane %v652_v7, 1  ;;  %v660_v11 = vrot.slane %v659_v8, 1 }
 0x1e1   :  { %v695_v12 = vrot.slane %v688_v9, %v686_v32 }
 0x1e2   :  { %v654_v13 = vadd.f32 %v653_v10, %v652_v7  ;;  %v661_v14 = vadd.f32 %v660_v11, %v659_v8 }
 0x1e3   :  { %v700_v15 = vrot.slane %v695_v12, 7 }
 0x1e4   :  { %v680_v40 = vcombine.low %v654_v13, %v661_v14 }
 0x1e6   :  { %v687_v16 = vrot.slane %v680_v40, %v686_v32 }
 0x1e8   :  { %v702_v17 = vsel %vm701_vm10, %v700_v15, %v687_v16 }
 0x1e9   :  { %v704_v18 = vsel %vm703_vm11, %v700_v15, %v702_v17 }
 0x1ea   :  { %v706_v19 = vsel %vm705_vm12, %v700_v15, %v704_v18 }
 0x1eb   :  { %v708_v20 = vsel %vm707_vm13, %v700_v15, %v706_v19 }
 0x1ec   :  { %710 = vst [vmem:[%s1081_s8] sm:$0xf] %v708_v20 }
 0x1ed   :  { %715 = vsyncpa [#allocation3], 1 }
 0x1ee   :  { %716 = vsyncpa [#allocation5], 1 }

</bundles_post_ra>
